<compile_context>
chip_gen: v7x
topology: tpu7x:2x2x1
jax: 0.10.0
libtpu: 0.0.40
codegen_flags: <defaults>
</compile_context>

<pallas_src>
import functools

import jax
import jax.numpy as jnp
from jax.experimental import pallas as pl
from jax.experimental.pallas import tpu as pltpu

LANE = 128
SUBLANE = 8


def _round_up(n, m):
    return -(-n // m) * m


def mlp_kernel(x_ref, w1_ref, b1_ref, w2_ref, b2_ref, o_ref):
    # x:  (tb, in) f32      w1: (in, Np) f32   b1: (1, Np) f32
    # w2: (Np, Op) bf16     b2: (1, Op) f32    o:  (tb, Op) f32
    x = x_ref[...]
    in_features = x_ref.shape[1]

    # Layer 1: K == 2 contraction -> pure VPU broadcast-multiply-add (an MXU
    # matmul would pad K to a full systolic pass for 2 useful FMAs/element).
    h = b1_ref[...]                               # (1, Np), broadcasts over rows
    for k in range(in_features):                  # static, tiny (== 2)
        h = h + x[:, k:k + 1] * w1_ref[k:k + 1, :]
    h = jnp.maximum(h, 0.0)                       # F.relu

    # Layer 2: bf16 x bf16 -> f32 accumulate on the MXU, f32 bias add.
    y = jnp.dot(h.astype(w2_ref.dtype), w2_ref[...],
                preferred_element_type=jnp.float32) + b2_ref[...]
    o_ref[...] = y.astype(o_ref.dtype)


def prepare_params(w1, b1, w2, b2):
    """One-time padding / dtype prep (keep the hot path free of pad HLOs).

    w1:(2,N) b1:(1,N) w2:(N,3) b2:(1,3) ->
    w1_p:(2,Np) f32, b1_p:(1,Np) f32, w2_p:(Np,8) bf16, b2_p:(1,8) f32
    with Np = round_up(N, 128).  Padded hidden columns are exactly 0 after
    ReLU; padded output columns stay exactly 0 and are sliced off later.
    """
    in_features, neuron = w1.shape
    out_features = w2.shape[1]
    n_pad = _round_up(neuron, LANE)
    out_pad = _round_up(out_features, SUBLANE)

    w1_p = jnp.pad(w1, ((0, 0), (0, n_pad - neuron))).astype(jnp.float32)
    b1_p = jnp.pad(b1, ((0, 0), (0, n_pad - neuron))).astype(jnp.float32)
    w2_p = jnp.pad(w2, ((0, n_pad - neuron),
                        (0, out_pad - out_features))).astype(jnp.bfloat16)
    b2_p = jnp.pad(b2, ((0, 0), (0, out_pad - out_features))).astype(jnp.float32)
    return w1_p, b1_p, w2_p, b2_p


@functools.partial(jax.jit, static_argnames=("out_features", "block_b"))
def net_forward(x, w1_p, b1_p, w2_p, b2_p, *, out_features, block_b=1024):
    """Pallas forward for Net, taking pre-padded params from prepare_params."""
    B, in_features = x.shape
    n_pad = w1_p.shape[1]
    out_pad = w2_p.shape[1]

    # Batch tile: multiple of 8, ~ceil(B/2) so non-trivial B gets >= 2 grid
    # steps (v7x megacore), capped at block_b to bound live VMEM (< 4 MiB).
    tb = max(SUBLANE, min(block_b, _round_up(pl.cdiv(B, 2), SUBLANE)))
    grid = (pl.cdiv(B, tb),)   # ragged last tile: OOB rows clipped on writeback

    flops = 2 * B * in_features * n_pad + 2 * B * n_pad * out_pad
    bytes_accessed = (4 * (x.size + w1_p.size + b1_p.size + b2_p.size
                           + B * out_pad)
                      + 2 * w2_p.size)

    out_p = pl.pallas_call(
        mlp_kernel,
        out_shape=jax.ShapeDtypeStruct((B, out_pad), x.dtype),
        grid=grid,
        in_specs=[
            pl.BlockSpec((tb, in_features), lambda i: (i, 0)),     # x: batch-tiled
            pl.BlockSpec((in_features, n_pad), lambda i: (0, 0)),  # w1: resident
            pl.BlockSpec((1, n_pad), lambda i: (0, 0)),            # b1: resident
            pl.BlockSpec((n_pad, out_pad), lambda i: (0, 0)),      # w2: resident
            pl.BlockSpec((1, out_pad), lambda i: (0, 0)),          # b2: resident
        ],
        out_specs=pl.BlockSpec((tb, out_pad), lambda i: (i, 0)),
        compiler_params=pltpu.CompilerParams(
            dimension_semantics=("parallel",),     # megacore split on v7x
        ),
        cost_estimate=pl.CostEstimate(
            flops=flops, transcendentals=0, bytes_accessed=bytes_accessed),
    )(x, w1_p, b1_p, w2_p, b2_p)

    return out_p[:, :out_features]


def init_params(key, in_features=2, neuron=500, out_features=3,
                dtype=jnp.float32):
    """PyTorch-style init: U(-1/sqrt(fan_in), 1/sqrt(fan_in)); weights stored
    pre-transposed as (in, out)."""
    k1, k2, k3, k4 = jax.random.split(key, 4)
    bound1 = 1.0 / (in_features ** 0.5)
    bound2 = 1.0 / (neuron ** 0.5)
    w1 = jax.random.uniform(k1, (in_features, neuron), dtype, -bound1, bound1)
    b1 = jax.random.uniform(k2, (1, neuron), dtype, -bound1, bound1)
    w2 = jax.random.uniform(k3, (neuron, out_features), dtype, -bound2, bound2)
    b2 = jax.random.uniform(k4, (1, out_features), dtype, -bound2, bound2)
    return w1, b1, w2, b2


if __name__ == "__main__":
    key = jax.random.PRNGKey(0)
    kx, kp = jax.random.split(key)

    # Small shapes consistent with the module: Linear(2, 500) -> ReLU -> Linear(500, 3)
    batch, in_features, neuron, out_features = 8, 2, 500, 3
    x = jax.random.normal(kx, (batch, in_features), jnp.float32)
    w1, b1, w2, b2 = init_params(kp, in_features, neuron, out_features)

    # One-time prep (outside the per-call hot path).
    w1_p, b1_p, w2_p, b2_p = prepare_params(w1, b1, w2, b2)

    out = net_forward(x, w1_p, b1_p, w2_p, b2_p, out_features=out_features)
    out = jax.block_until_ready(out)
    assert out.shape == (batch, out_features)

    # Reference matching the kernel's numerics (bf16 MXU inputs, f32 accumulate).
    h_ref = jnp.maximum(x @ w1 + b1, 0.0)
    ref_bf16 = jnp.dot(h_ref.astype(jnp.bfloat16), w2.astype(jnp.bfloat16),
                       preferred_element_type=jnp.float32) + b2
    assert jnp.allclose(out, ref_bf16, atol=2e-3, rtol=1e-2)

    # Pure-f32 reference: loosened tolerance (deliberate bf16 layer-2 tradeoff).
    ref_f32 = h_ref @ w2 + b2
    assert jnp.allclose(out, ref_f32, atol=2e-2, rtol=2e-2)

    # TODO(synk): Net.loss (margin loss) is a training-time helper, not part of
    # forward(); it is intentionally not implemented as a kernel.

    print("KERNEL_OK")
</pallas_src>

<mosaic_0001>
module attributes {stable_mosaic.version = 11 : i64} {
  func.func @mlp_kernel(%arg0: i32, %arg1: memref<8x2xf32, #tpu.memory_space<vmem>>, %arg2: memref<2x512xf32, #tpu.memory_space<vmem>>, %arg3: memref<1x512xf32, #tpu.memory_space<vmem>>, %arg4: memref<512x8xbf16, #tpu.memory_space<vmem>>, %arg5: memref<1x8xf32, #tpu.memory_space<vmem>>, %arg6: memref<8x8xf32, #tpu.memory_space<vmem>>) attributes {dimension_semantics = [#tpu.dimension_semantics<parallel>], iteration_bounds = array<i64: 1>, scalar_prefetch = 0 : i64, scratch_operands = 0 : i64, tpu.core_type = #tpu.core_type<tc>, window_params = [{transform_indices = @transform_0, window_bounds = array<i64: 8, 2>}, {pipeline_mode = #tpu.pipeline_mode<synchronous>, transform_indices = @transform_1, window_bounds = array<i64: 2, 512>}, {pipeline_mode = #tpu.pipeline_mode<synchronous>, transform_indices = @transform_2, window_bounds = array<i64: 1, 512>}, {pipeline_mode = #tpu.pipeline_mode<synchronous>, transform_indices = @transform_3, window_bounds = array<i64: 512, 8>}, {pipeline_mode = #tpu.pipeline_mode<synchronous>, transform_indices = @transform_4, window_bounds = array<i64: 1, 8>}, {transform_indices = @transform_5, window_bounds = array<i64: 8, 8>}]} {
    %c0 = arith.constant 0 : index
    %c0_0 = arith.constant 0 : index
    %0 = vector.load %arg1[%c0, %c0_0] : memref<8x2xf32, #tpu.memory_space<vmem>>, vector<8x2xf32>
    %c0_1 = arith.constant 0 : index
    %c0_2 = arith.constant 0 : index
    %1 = vector.load %arg3[%c0_1, %c0_2] : memref<1x512xf32, #tpu.memory_space<vmem>>, vector<1x512xf32>
    %2 = vector.extract_strided_slice %0 {offsets = [0, 0], sizes = [8, 1], strides = [1, 1]} : vector<8x2xf32> to vector<8x1xf32>
    %c0_3 = arith.constant 0 : index
    %c0_4 = arith.constant 0 : index
    %3 = vector.load %arg2[%c0_3, %c0_4] : memref<2x512xf32, #tpu.memory_space<vmem>>, vector<1x512xf32>
    %4 = vector.broadcast %2 : vector<8x1xf32> to vector<8x512xf32>
    %5 = vector.broadcast %3 : vector<1x512xf32> to vector<8x512xf32>
    %6 = arith.mulf %4, %5 : vector<8x512xf32>
    %7 = vector.broadcast %1 : vector<1x512xf32> to vector<8x512xf32>
    %8 = arith.addf %7, %6 : vector<8x512xf32>
    %9 = vector.extract_strided_slice %0 {offsets = [0, 1], sizes = [8, 1], strides = [1, 1]} : vector<8x2xf32> to vector<8x1xf32>
    %c1 = arith.constant 1 : index
    %c0_5 = arith.constant 0 : index
    %10 = vector.load %arg2[%c1, %c0_5] : memref<2x512xf32, #tpu.memory_space<vmem>>, vector<1x512xf32>
    %11 = vector.broadcast %9 : vector<8x1xf32> to vector<8x512xf32>
    %12 = vector.broadcast %10 : vector<1x512xf32> to vector<8x512xf32>
    %13 = arith.mulf %11, %12 : vector<8x512xf32>
    %14 = arith.addf %8, %13 : vector<8x512xf32>
    %cst = arith.constant 0.000000e+00 : f32
    %15 = vector.broadcast %cst : f32 to vector<8x512xf32>
    %16 = arith.maximumf %14, %15 : vector<8x512xf32>
    %17 = arith.truncf %16 : vector<8x512xf32> to vector<8x512xbf16>
    %c0_6 = arith.constant 0 : index
    %c0_7 = arith.constant 0 : index
    %18 = vector.load %arg4[%c0_6, %c0_7] : memref<512x8xbf16, #tpu.memory_space<vmem>>, vector<512x8xbf16>
    %cst_8 = arith.constant dense<0.000000e+00> : vector<8x8xf32>
    %19 = tpu.matmul %17, %18, %cst_8 {dimension_numbers = #tpu.dot_dimension_numbers<[1], [0], [0], [1], [0, 0, 1, 1], [], []>} : vector<8x512xbf16>, vector<512x8xbf16>, vector<8x8xf32> -> vector<8x8xf32>
    %c0_9 = arith.constant 0 : index
    %c0_10 = arith.constant 0 : index
    %20 = vector.load %arg5[%c0_9, %c0_10] : memref<1x8xf32, #tpu.memory_space<vmem>>, vector<1x8xf32>
    %21 = vector.broadcast %20 : vector<1x8xf32> to vector<8x8xf32>
    %22 = arith.addf %19, %21 : vector<8x8xf32>
    %c0_11 = arith.constant 0 : index
    %c0_12 = arith.constant 0 : index
    %23 = vector.load %arg6[%c0_11, %c0_12] : memref<8x8xf32, #tpu.memory_space<vmem>>, vector<8x8xf32>
    tpu.vector_store %arg6[%c0_11, %c0_12], %22 {strides = array<i32>} : memref<8x8xf32, #tpu.memory_space<vmem>>, vector<8x8xf32>,
    return
  }
  func.func @transform_0(%arg0: i32) -> (i32, i32) {
    %c0_i32 = arith.constant 0 : i32
    %c0_i32_0 = arith.constant 0 : i32
    return %arg0, %c0_i32 : i32, i32
  }
  func.func @transform_1(%arg0: i32) -> (i32, i32) {
    %c0_i32 = arith.constant 0 : i32
    %c0_i32_0 = arith.constant 0 : i32
    %c0_i32_1 = arith.constant 0 : i32
    return %c0_i32, %c0_i32_0 : i32, i32
  }
  func.func @transform_2(%arg0: i32) -> (i32, i32) {
    %c0_i32 = arith.constant 0 : i32
    %c0_i32_0 = arith.constant 0 : i32
    %c0_i32_1 = arith.constant 0 : i32
    return %c0_i32, %c0_i32_0 : i32, i32
  }
  func.func @transform_3(%arg0: i32) -> (i32, i32) {
    %c0_i32 = arith.constant 0 : i32
    %c0_i32_0 = arith.constant 0 : i32
    %c0_i32_1 = arith.constant 0 : i32
    return %c0_i32, %c0_i32_0 : i32, i32
  }
  func.func @transform_4(%arg0: i32) -> (i32, i32) {
    %c0_i32 = arith.constant 0 : i32
    %c0_i32_0 = arith.constant 0 : i32
    %c0_i32_1 = arith.constant 0 : i32
    return %c0_i32, %c0_i32_0 : i32, i32
  }
  func.func @transform_5(%arg0: i32) -> (i32, i32) {
    %c0_i32 = arith.constant 0 : i32
    %c0_i32_0 = arith.constant 0 : i32
    return %arg0, %c0_i32 : i32, i32
  }
}

</mosaic_0001>

<bundles_post_ra>
// kernel: net_forward.1
= control target key start
LH: loop header
LB: loop body
LE: loop exit
PB: predicated region body
PF: predicated region fallthrough
CT: control target
= control target key end

     0   :  { %v585_v0 = vmov 0   ;;  %v586_v6 = vmov 1   ;;  %v30_v35 = vlaneseq  ;;  %vm465_vm0 = vcmask 64512   ;;  %s731_s0 = inlined_call_operand.vmem [shape: f32[8,2], index: 0, kind: input, shape index: {}]   ;;  %s732_s3 = inlined_call_operand.vmem [shape: bf16[512,8], index: 3, kind: input, shape index: {}]   ;;  %s733_s1 = inlined_call_operand.vmem [shape: f32[2,512], index: 1, kind: input, shape index: {}]   ;;  %s734_s2 = inlined_call_operand.vmem [shape: f32[1,512], index: 2, kind: input, shape index: {}]   ;;  %s735_s4 = inlined_call_operand.vmem [shape: f32[1,8], index: 4, kind: input, shape index: {}]   ;;  %s736_s5 = inlined_call_operand.vmem [shape: f32[8,8], index: 5, kind: output, shape index: {}]  }
   0x1   :  { %551 = vset.pattern.permute.xlu0 %v585_v0  ;;  %v21_v1 = vld [vmem:[%s731_s0] sm:$0xff]  ;;  %v557_v7 = vld [vmem:[%s732_s3 + $0x48] sm:$0xff]   ;;  %v561_v11 = vld [vmem:[%s732_s3 + $0x50] sm:$0xff]  }
   0x2   :  { %26 = vperm.xlu0 %551, %v21_v1   ;;  %v553_v2 = vld [vmem:[%s732_s3 + $0x40] sm:$0xff]   ;;  %v558_v8 = vld [vmem:[%s732_s3 + $0xc8] sm:$0xff]   ;;  %v562_v12 = vld [vmem:[%s732_s3 + $0xd0] sm:$0xff]   ;;  %v31_v36 = vshrl.u32 %v30_v35, 7 }
   0x3   :  { %v554_v3 = vld [vmem:[%s732_s3 + $0xc0] sm:$0xff]   ;;  %505 = vmatprep.subr.bf16.mxu0 %v553_v2  ;;  %v559_v9 = vld [vmem:[%s732_s3 + $0x8] sm:$0xff]   ;;  %v563_v13 = vld [vmem:[%s732_s3 + $0x10] sm:$0xff]  }
   0x4   :  { %v555_v4 = vld [vmem:[%s732_s3] sm:$0xff]   ;;  %527 = vmatprep.subr.bf16.mxu1 %v554_v3  ;;  %v560_v10 = vld [vmem:[%s732_s3 + $0x88] sm:$0xff]   ;;  %v564_v14 = vld [vmem:[%s732_s3 + $0x90] sm:$0xff]   ;;  %v32_v37 = vsub.s32 0, %v31_v36  ;;  %v40_v38 = vsub.s32 2, %v31_v36  ;;  %v36_v39 = vsub.s32 1, %v31_v36 }
   0x5   :  { %v556_v5 = vld [vmem:[%s732_s3 + $0x80] sm:$0xff]   ;;  %506 = vmatpush3.bf16.msra.mxu0 %v555_v4  ;;  %v565_v15 = vld [vmem:[%s732_s3 + $0x58] sm:$0xff]   ;;  %v573_v23 = vld [vmem:[%s732_s3 + $0x68] sm:$0xff]   ;;  %v44_v40 = vsub.s32 3, %v31_v36 }
   0x6   :  { %552 = vset.pattern.permute.xlu0 %v586_v6  ;;  %528 = vmatpush3.bf16.msra.mxu1 %v556_v5  ;;  %v566_v16 = vld [vmem:[%s732_s3 + $0xd8] sm:$0xff]   ;;  %v569_v19 = vld [vmem:[%s732_s3 + $0x60] sm:$0xff]   ;;  %v574_v24 = vld [vmem:[%s732_s3 + $0xe8] sm:$0xff]  }
   0x7   :  { %82 = vperm.xlu0 %552, %v21_v1   ;;  %507 = vmatprep.subr.bf16.mxu0 %v557_v7  ;;  %v567_v17 = vld [vmem:[%s732_s3 + $0x18] sm:$0xff]   ;;  %v570_v20 = vld [vmem:[%s732_s3 + $0xe0] sm:$0xff]   ;;  %v575_v25 = vld [vmem:[%s732_s3 + $0x28] sm:$0xff]  }
   0x8   :  { %529 = vmatprep.subr.bf16.mxu1 %v558_v8  ;;  %v568_v18 = vld [vmem:[%s732_s3 + $0x98] sm:$0xff]   ;;  %v571_v21 = vld [vmem:[%s732_s3 + $0x20] sm:$0xff]   ;;  %v576_v26 = vld [vmem:[%s732_s3 + $0xa8] sm:$0xff]  }
   0x9   :  { %508 = vmatpush3.bf16.msra.mxu0 %v559_v9  ;;  %v572_v22 = vld [vmem:[%s732_s3 + $0xa0] sm:$0xff]   ;;  %v577_v27 = vld [vmem:[%s732_s3 + $0x70] sm:$0xff]   ;;  %v581_v31 = vld [vmem:[%s732_s3 + $0x78] sm:$0xff]  }
   0xa   :  { %530 = vmatpush3.bf16.msra.mxu1 %v560_v10  ;;  %509 = vmatprep.subr.bf16.mxu0 %v561_v11  ;;  %v578_v28 = vld [vmem:[%s732_s3 + $0xf0] sm:$0xff]   ;;  %v582_v32 = vld [vmem:[%s732_s3 + $0xf8] sm:$0xff]   ;;  %v23_v41 = vld [vmem:[%s733_s1] ss:$2 sm:$0xf] }
   0xb   :  { %531 = vmatprep.subr.bf16.mxu1 %v562_v12  ;;  %v579_v29 = vld [vmem:[%s732_s3 + $0x30] sm:$0xff]   ;;  %v583_v33 = vld [vmem:[%s732_s3 + $0x38] sm:$0xff]   ;;  %v33_v42 = vrot.slane %v23_v41, %v32_v37  ;;  %v41_v43 = vrot.slane %v23_v41, %v40_v38  ;;  %v22_v44 = vld [vmem:[%s734_s2] sm:$0xf]  ;;  %v37_v45 = vrot.slane %v23_v41, %v36_v39  ;;  %v45_v46 = vrot.slane %v23_v41, %v44_v40 }
   0xc   :  { %v580_v30 = vld [vmem:[%s732_s3 + $0xb0] sm:$0xff]   ;;  %v584_v34 = vld [vmem:[%s732_s3 + $0xb8] sm:$0xff]   ;;  %v471_v47 = vld [vmem:[%s733_s1 + $0x1] ss:$2 sm:$0xf]  ;;  %v62_v49 = vrot.slane %v22_v44, %v36_v39  ;;  %v70_v50 = vrot.slane %v22_v44, %v44_v40  ;;  %v58_v51 = vrot.slane %v22_v44, %v32_v37  ;;  %v66_v52 = vrot.slane %v22_v44, %v40_v38 }
   0xd   :  { %510 = vmatpush3.bf16.msra.mxu0 %v563_v13  ;;  %v89_v57 = vrot.slane %v471_v47, %v32_v37  ;;  %v97_v58 = vrot.slane %v471_v47, %v40_v38  ;;  %v93_v59 = vrot.slane %v471_v47, %v36_v39  ;;  %v101_v60 = vrot.slane %v471_v47, %v44_v40 }
   0xe   :  { %532 = vmatpush3.bf16.msra.mxu1 %v564_v14  ;;  %511 = vmatprep.subr.bf16.mxu0 %v565_v15 }
   0xf   :  { %533 = vmatprep.subr.bf16.mxu1 %v566_v16 }
  0x11   :  { %512 = vmatpush3.bf16.msra.mxu0 %v567_v17 }
  0x12   :  { %534 = vmatpush3.bf16.msra.mxu1 %v568_v18  ;;  %513 = vmatprep.subr.bf16.mxu0 %v569_v19 }
  0x13   :  { %535 = vmatprep.subr.bf16.mxu1 %v570_v20  ;;  %v472_v20 = vld [vmem:[%s735_s4] ss:$0 sm:$0xff] }
  0x15   :  { %514 = vmatpush3.bf16.msra.mxu0 %v571_v21 }
  0x16   :  { %536 = vmatpush3.bf16.msra.mxu1 %v572_v22  ;;  %515 = vmatprep.subr.bf16.mxu0 %v573_v23 }
  0x17   :  { %537 = vmatprep.subr.bf16.mxu1 %v574_v24 }
  0x19   :  { %516 = vmatpush3.bf16.msra.mxu0 %v575_v25 }
  0x1a   :  { %538 = vmatpush3.bf16.msra.mxu1 %v576_v26  ;;  %517 = vmatprep.subr.bf16.mxu0 %v577_v27 }
  0x1b   :  { %539 = vmatprep.subr.bf16.mxu1 %v578_v28 }
  0x1d   :  { %518 = vmatpush3.bf16.msra.mxu0 %v579_v29 }
  0x1e   :  { %540 = vmatpush3.bf16.msra.mxu1 %v580_v30  ;;  %519 = vmatprep.subr.bf16.mxu0 %v581_v31 }
  0x1f   :  { %541 = vmatprep.subr.bf16.mxu1 %v582_v32 }
  0x21   :  { %520 = vmatpush3.bf16.msra.mxu0 %v583_v33 }
  0x22   :  { %542 = vmatpush3.bf16.msra.mxu1 %v584_v34 }
  0x81   :  { %v27_v48 = vpop.permute.xlu0 %26 }
  0x82   :  { %v50_v53 = vmul.f32 %v33_v42, %v27_v48  ;;  %v52_v54 = vmul.f32 %v41_v43, %v27_v48  ;;  %v51_v55 = vmul.f32 %v37_v45, %v27_v48  ;;  %v53_v56 = vmul.f32 %v45_v46, %v27_v48 }
  0x84   :  { %v76_v62 = vadd.f32 %v62_v49, %v51_v55  ;;  %v78_v63 = vadd.f32 %v70_v50, %v53_v56  ;;  %v75_v0 = vadd.f32 %v58_v51, %v50_v53  ;;  %v77_v1 = vadd.f32 %v66_v52, %v52_v54 }
  0x86   :  { %v83_v61 = vpop.permute.xlu0 %82 }
  0x87   :  { %v106_v2 = vmul.f32 %v89_v57, %v83_v61  ;;  %v108_v3 = vmul.f32 %v97_v58, %v83_v61  ;;  %v107_v4 = vmul.f32 %v93_v59, %v83_v61  ;;  %v109_v5 = vmul.f32 %v101_v60, %v83_v61 }
  0x89   :  { %v111_v6 = vadd.f32 %v107_v4, %v76_v62  ;;  %v113_v7 = vadd.f32 %v109_v5, %v78_v63  ;;  %v110_v8 = vadd.f32 %v106_v2, %v75_v0  ;;  %v112_v9 = vadd.f32 %v108_v3, %v77_v1 }
  0x8b   :  { %v115_v10 = vmax.f32 %v111_v6, 0.0  ;;  %v117_v11 = vmax.f32 %v113_v7, 0.0  ;;  %v114_v12 = vmax.f32 %v110_v8, 0.0  ;;  %v116_v13 = vmax.f32 %v112_v9, 0.0 }
  0x8d   :  { %v119_v14 = vpack.c.bf16 %v115_v10, %v115_v10  ;;  %v121_v15 = vpack.c.bf16 %v117_v11, %v117_v11  ;;  %v118_v16 = vpack.c.bf16 %v114_v12, %v114_v12  ;;  %v120_v17 = vpack.c.bf16 %v116_v13, %v116_v13 }
  0x8f   :  { %417 = vmatprep.mubr.bf16.mxu0 %v119_v14  ;;  %457 = vmatprep.mubr.bf16.mxu1 %v121_v15 }
  0x90   :  { %418 = vmatmul.mubr.bf16.vlgmr.msra.gmra.mrb[0].mxu0 %v118_v16  ;;  %458 = vmatmul.mubr.bf16.vlgmr.msra.gmra.mrb[0].mxu1 %v120_v17 }
 0x163   :  { %v521_v18 = vpop.f32.mrb[0].mxu0  ;;  %v543_v19 = vpop.f32.mrb[0].mxu1 }
 0x164   :  { %v522_v21 = vpop.f32.mrb[1].mxu0  ;;  %v544_v22 = vpop.f32.mrb[1].mxu1 }
 0x165   :  { %v523_v23 = vadd.f32 %v522_v21, %v521_v18  ;;  %v545_v24 = vadd.f32 %v544_v22, %v543_v19  ;;  %v524_v25 = vpop.f32.mrb[2].mxu0  ;;  %v546_v26 = vpop.f32.mrb[2].mxu1 }
 0x166   :  { %v525_v27 = vpop.f32.mrb[3].mxu0  ;;  %v547_v28 = vpop.f32.mrb[3].mxu1 }
 0x167   :  { %v420_v29 = vadd.f32 %v523_v23, %v472_v20 }
 0x169   :  { %v460_v30 = vadd.f32 %v545_v24, %v420_v29 }
 0x16b   :  { %466 = vst.msk [vmem:[%s736_s5] sm:$0xff] %vm465_vm0, %v460_v30 }

</bundles_post_ra>
